<compile_context>
chip_gen: v7x
topology: tpu7x:2x2x1
jax: 0.10.0
libtpu: 0.0.40
codegen_flags: <defaults>
</compile_context>

<pallas_src>
import jax
import jax.numpy as jnp
from jax.experimental import pallas as pl
from jax.experimental.pallas import tpu as pltpu


def dae_kernel(x_ref, w1_ref, b1_ref, w2_ref, b2_ref, w3_ref, b3_ref,
               w4_ref, b4_ref, o_ref):
    # Read biases once per tile (hoisted broadcasts); keep them f32.
    b1 = b1_ref[...]
    b2 = b2_ref[...]
    b3 = b3_ref[...]
    b4 = b4_ref[...]

    # encoder: Linear -> ReLU -> Linear -> ReLU   (bf16 MXU operands, f32 acc)
    h = jnp.dot(x_ref[...], w1_ref[...], preferred_element_type=jnp.float32)
    h = jnp.maximum(h + b1, 0.0).astype(jnp.bfloat16)
    h = jnp.dot(h, w2_ref[...], preferred_element_type=jnp.float32)
    h = jnp.maximum(h + b2, 0.0).astype(jnp.bfloat16)

    # decoder: Linear -> ReLU -> Linear (no final ReLU)
    h = jnp.dot(h, w3_ref[...], preferred_element_type=jnp.float32)
    h = jnp.maximum(h + b3, 0.0).astype(jnp.bfloat16)
    out = jnp.dot(h, w4_ref[...], preferred_element_type=jnp.float32)
    o_ref[...] = (out + b4).astype(o_ref.dtype)


def _round_up(v, m):
    return ((v + m - 1) // m) * m


def deep_autoencoder(x, params, *, tb=512, out_dtype=jnp.bfloat16):
    """x: (B, input_size), ideally bf16 (f32 is cast). params: bf16 transposed
    weights + f32 (1, out) biases.  Returns (B, input_size) in out_dtype.

    tb: batch tile.  Default 512 amortizes the ~0.35 us per-grid-step overhead;
    it is capped at round_up(cdiv(B, 2), 8) so the grid has at least two steps
    whenever possible (lets v7x's two TensorCores split the "parallel" axis) and
    the batch is padded to a multiple of tb so every output tile is a clean,
    unmasked lane-dense store.
    """
    B, D = x.shape
    if x.dtype != jnp.bfloat16:
        x = x.astype(jnp.bfloat16)

    # --- batch tile selection --------------------------------------------
    tb = max(8, _round_up(int(tb), 8))
    # >= 2 grid steps whenever B > 8 (v7x megacore); floors at the 8-row sublane.
    tb = min(tb, _round_up(pl.cdiv(B, 2), 8))

    # --- pad batch to a whole number of tiles -----------------------------
    Bp = _round_up(B, tb)
    if Bp != B:
        x = jnp.pad(x, ((0, Bp - B), (0, 0)))
    grid = (Bp // tb,)

    w1, b1, w2, b2, w3, b3, w4, b4 = (
        params["w1"], params["b1"], params["w2"], params["b2"],
        params["w3"], params["b3"], params["w4"], params["b4"],
    )

    def full(arr):
        # Whole-array block with a constant block index for every grid step
        # -> stays resident in VMEM, not re-DMA'd per step.
        # (pl.Buffered(1) would also drop the duplicate pipeline buffer, but the
        #  ~0.8 MiB saved is negligible; default buffering kept for portability.)
        return pl.BlockSpec(arr.shape, lambda i: (0,) * arr.ndim)

    # Advisory cost estimate: 4 GEMMs; bf16 weights/activations + f32 biases.
    h1, h2 = 512, 128
    flops = 2 * Bp * (D * h1 + h1 * h2 + h2 * h1 + h1 * D)
    weight_bytes = sum(int(a.size) * a.dtype.itemsize
                       for a in (w1, b1, w2, b2, w3, b3, w4, b4))
    act_bytes = Bp * D * (x.dtype.itemsize + jnp.dtype(out_dtype).itemsize)
    cost = pl.CostEstimate(flops=flops, transcendentals=0,
                           bytes_accessed=weight_bytes + act_bytes)

    out = pl.pallas_call(
        dae_kernel,
        out_shape=jax.ShapeDtypeStruct((Bp, D), out_dtype),
        grid_spec=pltpu.PrefetchScalarGridSpec(
            num_scalar_prefetch=0,
            grid=grid,
            in_specs=[
                pl.BlockSpec((tb, D), lambda i: (i, 0)),   # bf16 x tile over batch
                full(w1), full(b1),
                full(w2), full(b2),
                full(w3), full(b3),
                full(w4), full(b4),
            ],
            out_specs=pl.BlockSpec((tb, D), lambda i: (i, 0)),
        ),
        compiler_params=pltpu.CompilerParams(
            dimension_semantics=("parallel",),
            vmem_limit_bytes=32 * 1024 * 1024,   # v5e default is 16 MiB; be explicit
        ),
        cost_estimate=cost,
    )(x, w1, b1, w2, b2, w3, b3, w4, b4)

    return out[:B] if Bp != B else out


def init_params(key, input_size):
    """Deterministic PyTorch-style (uniform +-1/sqrt(fan_in)) init.
    Weights stored transposed (in_features, out_features) in bf16 for the MXU;
    biases kept f32 as (1, out)."""
    dims = [(input_size, 512), (512, 128), (128, 512), (512, input_size)]
    params = {}
    for idx, (fan_in, fan_out) in enumerate(dims, start=1):
        key, kw, kb = jax.random.split(key, 3)
        bound = 1.0 / jnp.sqrt(fan_in)
        w = jax.random.uniform(kw, (fan_in, fan_out), jnp.float32, -bound, bound)
        b = jax.random.uniform(kb, (1, fan_out), jnp.float32, -bound, bound)
        params[f"w{idx}"] = w.astype(jnp.bfloat16)
        params[f"b{idx}"] = b
    return params


def reference(x, p, out_dtype=jnp.bfloat16):
    """Pure-JAX reference mirroring the kernel's bf16-operand / f32-accumulate math."""
    def layer(h, w, b, relu):
        y = jnp.dot(h.astype(jnp.bfloat16), w,
                    preferred_element_type=jnp.float32) + b
        if relu:
            return jnp.maximum(y, 0.0).astype(jnp.bfloat16)
        return y
    h = layer(x, p["w1"], p["b1"], True)
    h = layer(h, p["w2"], p["b2"], True)
    h = layer(h, p["w3"], p["b3"], True)
    return layer(h, p["w4"], p["b4"], False).astype(out_dtype)


if __name__ == "__main__":
    INPUT_SIZE = 256
    BATCH = 8          # small test batch; production batches use tb=512 tiles

    key = jax.random.PRNGKey(0)
    key, kx = jax.random.split(key)
    # Fast path: hand the kernel bf16 activations directly.
    x = jax.random.normal(kx, (BATCH, INPUT_SIZE), jnp.float32).astype(jnp.bfloat16)
    params = init_params(key, INPUT_SIZE)

    out = deep_autoencoder(x, params)
    out = jax.block_until_ready(out)

    ref = reference(x, params)
    assert out.shape == (BATCH, INPUT_SIZE)
    assert out.dtype == jnp.bfloat16
    # bf16 MXU operands with f32 accumulation: allow small accumulation-order noise.
    assert jnp.allclose(out.astype(jnp.float32), ref.astype(jnp.float32),
                        atol=2e-2, rtol=2e-2)

    print("KERNEL_OK")
</pallas_src>

<mosaic_0001>
module attributes {stable_mosaic.version = 11 : i64} {
  func.func @dae_kernel(%arg0: i32, %arg1: memref<8x256xbf16, #tpu.memory_space<vmem>>, %arg2: memref<256x512xbf16, #tpu.memory_space<vmem>>, %arg3: memref<1x512xf32, #tpu.memory_space<vmem>>, %arg4: memref<512x128xbf16, #tpu.memory_space<vmem>>, %arg5: memref<1x128xf32, #tpu.memory_space<vmem>>, %arg6: memref<128x512xbf16, #tpu.memory_space<vmem>>, %arg7: memref<1x512xf32, #tpu.memory_space<vmem>>, %arg8: memref<512x256xbf16, #tpu.memory_space<vmem>>, %arg9: memref<1x256xf32, #tpu.memory_space<vmem>>, %arg10: memref<8x256xbf16, #tpu.memory_space<vmem>>) attributes {dimension_semantics = [#tpu.dimension_semantics<parallel>], iteration_bounds = array<i64: 1>, scalar_prefetch = 0 : i64, scratch_operands = 0 : i64, tpu.core_type = #tpu.core_type<tc>, window_params = [{transform_indices = @transform_0, window_bounds = array<i64: 8, 256>}, {pipeline_mode = #tpu.pipeline_mode<synchronous>, transform_indices = @transform_1, window_bounds = array<i64: 256, 512>}, {pipeline_mode = #tpu.pipeline_mode<synchronous>, transform_indices = @transform_2, window_bounds = array<i64: 1, 512>}, {pipeline_mode = #tpu.pipeline_mode<synchronous>, transform_indices = @transform_3, window_bounds = array<i64: 512, 128>}, {pipeline_mode = #tpu.pipeline_mode<synchronous>, transform_indices = @transform_4, window_bounds = array<i64: 1, 128>}, {pipeline_mode = #tpu.pipeline_mode<synchronous>, transform_indices = @transform_5, window_bounds = array<i64: 128, 512>}, {pipeline_mode = #tpu.pipeline_mode<synchronous>, transform_indices = @transform_6, window_bounds = array<i64: 1, 512>}, {pipeline_mode = #tpu.pipeline_mode<synchronous>, transform_indices = @transform_7, window_bounds = array<i64: 512, 256>}, {pipeline_mode = #tpu.pipeline_mode<synchronous>, transform_indices = @transform_8, window_bounds = array<i64: 1, 256>}, {transform_indices = @transform_9, window_bounds = array<i64: 8, 256>}]} {
    %c0 = arith.constant 0 : index
    %c0_0 = arith.constant 0 : index
    %0 = vector.load %arg3[%c0, %c0_0] : memref<1x512xf32, #tpu.memory_space<vmem>>, vector<1x512xf32>
    %c0_1 = arith.constant 0 : index
    %c0_2 = arith.constant 0 : index
    %1 = vector.load %arg5[%c0_1, %c0_2] : memref<1x128xf32, #tpu.memory_space<vmem>>, vector<1x128xf32>
    %c0_3 = arith.constant 0 : index
    %c0_4 = arith.constant 0 : index
    %2 = vector.load %arg7[%c0_3, %c0_4] : memref<1x512xf32, #tpu.memory_space<vmem>>, vector<1x512xf32>
    %c0_5 = arith.constant 0 : index
    %c0_6 = arith.constant 0 : index
    %3 = vector.load %arg9[%c0_5, %c0_6] : memref<1x256xf32, #tpu.memory_space<vmem>>, vector<1x256xf32>
    %c0_7 = arith.constant 0 : index
    %c0_8 = arith.constant 0 : index
    %4 = vector.load %arg1[%c0_7, %c0_8] : memref<8x256xbf16, #tpu.memory_space<vmem>>, vector<8x256xbf16>
    %c0_9 = arith.constant 0 : index
    %c0_10 = arith.constant 0 : index
    %5 = vector.load %arg2[%c0_9, %c0_10] : memref<256x512xbf16, #tpu.memory_space<vmem>>, vector<256x512xbf16>
    %cst = arith.constant dense<0.000000e+00> : vector<8x512xf32>
    %6 = tpu.matmul %4, %5, %cst {dimension_numbers = #tpu.dot_dimension_numbers<[1], [0], [0], [1], [0, 0, 1, 1], [], []>} : vector<8x256xbf16>, vector<256x512xbf16>, vector<8x512xf32> -> vector<8x512xf32>
    %7 = vector.broadcast %0 : vector<1x512xf32> to vector<8x512xf32>
    %8 = arith.addf %6, %7 : vector<8x512xf32>
    %cst_11 = arith.constant 0.000000e+00 : f32
    %9 = vector.broadcast %cst_11 : f32 to vector<8x512xf32>
    %10 = arith.maximumf %8, %9 : vector<8x512xf32>
    %11 = arith.truncf %10 : vector<8x512xf32> to vector<8x512xbf16>
    %c0_12 = arith.constant 0 : index
    %c0_13 = arith.constant 0 : index
    %12 = vector.load %arg4[%c0_12, %c0_13] : memref<512x128xbf16, #tpu.memory_space<vmem>>, vector<512x128xbf16>
    %cst_14 = arith.constant dense<0.000000e+00> : vector<8x128xf32>
    %13 = tpu.matmul %11, %12, %cst_14 {dimension_numbers = #tpu.dot_dimension_numbers<[1], [0], [0], [1], [0, 0, 1, 1], [], []>} : vector<8x512xbf16>, vector<512x128xbf16>, vector<8x128xf32> -> vector<8x128xf32>
    %14 = vector.broadcast %1 : vector<1x128xf32> to vector<8x128xf32>
    %15 = arith.addf %13, %14 : vector<8x128xf32>
    %cst_15 = arith.constant 0.000000e+00 : f32
    %16 = vector.broadcast %cst_15 : f32 to vector<8x128xf32>
    %17 = arith.maximumf %15, %16 : vector<8x128xf32>
    %18 = arith.truncf %17 : vector<8x128xf32> to vector<8x128xbf16>
    %c0_16 = arith.constant 0 : index
    %c0_17 = arith.constant 0 : index
    %19 = vector.load %arg6[%c0_16, %c0_17] : memref<128x512xbf16, #tpu.memory_space<vmem>>, vector<128x512xbf16>
    %cst_18 = arith.constant dense<0.000000e+00> : vector<8x512xf32>
    %20 = tpu.matmul %18, %19, %cst_18 {dimension_numbers = #tpu.dot_dimension_numbers<[1], [0], [0], [1], [0, 0, 1, 1], [], []>} : vector<8x128xbf16>, vector<128x512xbf16>, vector<8x512xf32> -> vector<8x512xf32>
    %21 = vector.broadcast %2 : vector<1x512xf32> to vector<8x512xf32>
    %22 = arith.addf %20, %21 : vector<8x512xf32>
    %cst_19 = arith.constant 0.000000e+00 : f32
    %23 = vector.broadcast %cst_19 : f32 to vector<8x512xf32>
    %24 = arith.maximumf %22, %23 : vector<8x512xf32>
    %25 = arith.truncf %24 : vector<8x512xf32> to vector<8x512xbf16>
    %c0_20 = arith.constant 0 : index
    %c0_21 = arith.constant 0 : index
    %26 = vector.load %arg8[%c0_20, %c0_21] : memref<512x256xbf16, #tpu.memory_space<vmem>>, vector<512x256xbf16>
    %cst_22 = arith.constant dense<0.000000e+00> : vector<8x256xf32>
    %27 = tpu.matmul %25, %26, %cst_22 {dimension_numbers = #tpu.dot_dimension_numbers<[1], [0], [0], [1], [0, 0, 1, 1], [], []>} : vector<8x512xbf16>, vector<512x256xbf16>, vector<8x256xf32> -> vector<8x256xf32>
    %28 = vector.broadcast %3 : vector<1x256xf32> to vector<8x256xf32>
    %29 = arith.addf %27, %28 : vector<8x256xf32>
    %30 = arith.truncf %29 : vector<8x256xf32> to vector<8x256xbf16>
    %c0_23 = arith.constant 0 : index
    %c0_24 = arith.constant 0 : index
    %31 = vector.load %arg10[%c0_23, %c0_24] : memref<8x256xbf16, #tpu.memory_space<vmem>>, vector<8x256xbf16>
    tpu.vector_store %arg10[%c0_23, %c0_24], %30 {strides = array<i32>} : memref<8x256xbf16, #tpu.memory_space<vmem>>, vector<8x256xbf16>,
    return
  }
  func.func @transform_0(%arg0: i32) -> (i32, i32) {
    %c0_i32 = arith.constant 0 : i32
    %c0_i32_0 = arith.constant 0 : i32
    return %arg0, %c0_i32 : i32, i32
  }
  func.func @transform_1(%arg0: i32) -> (i32, i32) {
    %c0_i32 = arith.constant 0 : i32
    %c0_i32_0 = arith.constant 0 : i32
    %c0_i32_1 = arith.constant 0 : i32
    return %c0_i32, %c0_i32_0 : i32, i32
  }
  func.func @transform_2(%arg0: i32) -> (i32, i32) {
    %c0_i32 = arith.constant 0 : i32
    %c0_i32_0 = arith.constant 0 : i32
    %c0_i32_1 = arith.constant 0 : i32
    return %c0_i32, %c0_i32_0 : i32, i32
  }
  func.func @transform_3(%arg0: i32) -> (i32, i32) {
    %c0_i32 = arith.constant 0 : i32
    %c0_i32_0 = arith.constant 0 : i32
    %c0_i32_1 = arith.constant 0 : i32
    return %c0_i32, %c0_i32_0 : i32, i32
  }
  func.func @transform_4(%arg0: i32) -> (i32, i32) {
    %c0_i32 = arith.constant 0 : i32
    %c0_i32_0 = arith.constant 0 : i32
    %c0_i32_1 = arith.constant 0 : i32
    return %c0_i32, %c0_i32_0 : i32, i32
  }
  func.func @transform_5(%arg0: i32) -> (i32, i32) {
    %c0_i32 = arith.constant 0 : i32
    %c0_i32_0 = arith.constant 0 : i32
    %c0_i32_1 = arith.constant 0 : i32
    return %c0_i32, %c0_i32_0 : i32, i32
  }
  func.func @transform_6(%arg0: i32) -> (i32, i32) {
    %c0_i32 = arith.constant 0 : i32
    %c0_i32_0 = arith.constant 0 : i32
    %c0_i32_1 = arith.constant 0 : i32
    return %c0_i32, %c0_i32_0 : i32, i32
  }
  func.func @transform_7(%arg0: i32) -> (i32, i32) {
    %c0_i32 = arith.constant 0 : i32
    %c0_i32_0 = arith.constant 0 : i32
    %c0_i32_1 = arith.constant 0 : i32
    return %c0_i32, %c0_i32_0 : i32, i32
  }
  func.func @transform_8(%arg0: i32) -> (i32, i32) {
    %c0_i32 = arith.constant 0 : i32
    %c0_i32_0 = arith.constant 0 : i32
    %c0_i32_1 = arith.constant 0 : i32
    return %c0_i32, %c0_i32_0 : i32, i32
  }
  func.func @transform_9(%arg0: i32) -> (i32, i32) {
    %c0_i32 = arith.constant 0 : i32
    %c0_i32_0 = arith.constant 0 : i32
    return %arg0, %c0_i32 : i32, i32
  }
}

</mosaic_0001>

<bundles_post_ra>
// kernel: tpu_custom_call.1
= control target key start
LH: loop header
LB: loop body
LE: loop exit
PB: predicated region body
PF: predicated region fallthrough
CT: control target
= control target key end

     0   :  { %14 = vsyncpa [#allocation3], 0  ;;  %s2625_s0 = inlined_call_operand.hbm [shape: bf16[8,256], index: 0, kind: input, shape index: {}]   ;;  %s2626_s1 = inlined_call_operand.hbm [shape: bf16[256,512], index: 1, kind: input, shape index: {}]   ;;  %s2627_s2 = inlined_call_operand.vmem [shape: f32[1,512], index: 2, kind: input, shape index: {}]   ;;  %s2628_s3 = inlined_call_operand.hbm [shape: bf16[512,128], index: 3, kind: input, shape index: {}]   ;;  %s2629_s4 = inlined_call_operand.vmem [shape: f32[1,128], index: 4, kind: input, shape index: {}]   ;;  %s2630_s5 = inlined_call_operand.hbm [shape: bf16[128,512], index: 5, kind: input, shape index: {}]   ;;  %s2631_s6 = inlined_call_operand.vmem [shape: f32[1,512], index: 6, kind: input, shape index: {}]   ;;  %s2632_s7 = inlined_call_operand.hbm [shape: bf16[512,256], index: 7, kind: input, shape index: {}]   ;;  %s2633_s8 = inlined_call_operand.vmem [shape: f32[1,256], index: 8, kind: input, shape index: {}]   ;;  %s2634_s9 = inlined_call_operand.hbm [shape: bf16[8,256], index: 9, kind: output, shape index: {}]  }
   0x1   :  { %15 = vsyncpa [#allocation6], 0 }
   0x2   :  { %16 = vsyncpa [#allocation9], 0 }
   0x3   :  { %17 = vsyncpa [#allocation4], 0  ;;  %s2431_s30 = smov [#allocation5]   ;;  %s2291_s13 = scalar_lea.hbm %s2626_s1, 8192 }
   0x4   :  { %s33_s10 = sshll.u32 %s2431_s30, 4  ;;  %p2292_p0 = scmp.ne.s32.totalorder %s2626_s1, %s2291_s13  ;;  %s34_s10 = int_to_ptr.vmem [resolvable:$true] %s33_s10 }
   0x5   :  { %p2295_p1 = scmp.lt.u32.totalorder %s2291_s13, %s2626_s1 }
   0x7   :  { %p2297_p2 = pnand %p2295_p1, %p2292_p0 }
   0x9   :  { %2300 = shalt.err (!%p2297_p2)
}
   0xa   :  { %s2301_s18 = scalar_lea.vmem %s34_s10, 8192  ;;  %p2306_p4 = scmp.lt.s32.totalorder %s34_s10, %s34_s10 }
   0xb   :  { %p2302_p3 = scmp.ne.s32.totalorder %s34_s10, %s2301_s18  ;;  %p2307_p5 = scmp.lt.s32.totalorder %s2301_s18, %s2301_s18 }
   0xd   :  { %p2308_p6 = por %p2307_p5, %p2306_p4 }
   0xf   :  { %p2309_p7 = pnand %p2308_p6, %p2302_p3 }
  0x11   :  { %2312 = shalt.err (!%p2309_p7)
}
  0x12   :  { %s2432_s19 = smov 256   ;;  %s2433_s20 = smov 16  }
  0x13   :  { %39 = dma.hbm_to_vmem [thread:$0]  %s2626_s1, 8192, %s34_s10, [#allocation6], %s2432_s19, %s2432_s19, %s2433_s20  }
  0x14   :  { %s2434_s23 = smov [#allocation8]   ;;  %s2435_s25 = smov [#allocation2]  }
  0x15   :  { %s61_s24 = sshll.u32 %s2434_s23, 4  ;;  %s24_s26 = sshll.u32 %s2435_s25, 4  ;;  %s62_s24 = int_to_ptr.vmem [resolvable:$true] %s61_s24  ;;  %s25_s26 = int_to_ptr.vmem [resolvable:$true] %s24_s26 }
  0x16   :  { %s2313_s29 = scalar_lea.hbm %s2630_s5, 4096 }
  0x17   :  { %p2314_p8 = scmp.ne.s32.totalorder %s2630_s5, %s2313_s29  ;;  %p2317_p9 = scmp.lt.u32.totalorder %s2313_s29, %s2630_s5 }
  0x19   :  { %p2319_p10 = pnand %p2317_p9, %p2314_p8 }
  0x1b   :  { %2322 = shalt.err (!%p2319_p10)
}
  0x1c   :  { %s2323_s1 = scalar_lea.vmem %s62_s24, 4096  ;;  %p2328_p12 = scmp.lt.s32.totalorder %s62_s24, %s62_s24 }
  0x1d   :  { %p2324_p11 = scmp.ne.s32.totalorder %s62_s24, %s2323_s1  ;;  %p2329_p13 = scmp.lt.s32.totalorder %s2323_s1, %s2323_s1 }
  0x1f   :  { %p2330_p0 = por %p2329_p13, %p2328_p12 }
  0x21   :  { %p2331_p1 = pnand %p2330_p0, %p2324_p11 }
  0x23   :  { %2334 = shalt.err (!%p2331_p1)
}
  0x24   :  { %67 = dma.hbm_to_vmem [thread:$0]  %s2630_s5, 4096, %s62_s24, [#allocation9], %s2432_s19, %s2432_s19, %s2433_s20  }
  0x25   :  { %s2335_s17 = scalar_lea.hbm %s2625_s0, 128 }
  0x26   :  { %p2336_p2 = scmp.ne.s32.totalorder %s2625_s0, %s2335_s17  ;;  %p2339_p3 = scmp.lt.u32.totalorder %s2335_s17, %s2625_s0 }
  0x28   :  { %p2341_p4 = pnand %p2339_p3, %p2336_p2 }
  0x2a   :  { %2344 = shalt.err (!%p2341_p4)
}
  0x2b   :  { %s2345_s25 = scalar_lea.vmem %s25_s26, 128  ;;  %p2350_p6 = scmp.lt.s32.totalorder %s25_s26, %s25_s26 }
  0x2c   :  { %p2346_p5 = scmp.ne.s32.totalorder %s25_s26, %s2345_s25  ;;  %p2351_p7 = scmp.lt.s32.totalorder %s2345_s25, %s2345_s25 }
  0x2e   :  { %p2352_p8 = por %p2351_p7, %p2350_p6 }
  0x30   :  { %p2353_p9 = pnand %p2352_p8, %p2346_p5 }
  0x32   :  { %2356 = shalt.err (!%p2353_p9)
}
  0x33   :  { %27 = dma.hbm_to_vmem [thread:$0]  %s2625_s0, 128, %s25_s26, [#allocation3]  }
  0x34   :  { %s2436_s20 = smov [#allocation7]   ;;  %s2357_s29 = scalar_lea.hbm %s2628_s3, 4096 }
  0x35   :  { %s47_s24 = sshll.u32 %s2436_s20, 4  ;;  %p2358_p10 = scmp.ne.s32.totalorder %s2628_s3, %s2357_s29  ;;  %s48_s24 = int_to_ptr.vmem [resolvable:$true] %s47_s24 }
  0x36   :  { %p2361_p11 = scmp.lt.u32.totalorder %s2357_s29, %s2628_s3 }
  0x38   :  { %p2363_p12 = pnand %p2361_p11, %p2358_p10 }
  0x3a   :  { %2366 = shalt.err (!%p2363_p12)
}
  0x3b   :  { %s2367_s1 = scalar_lea.vmem %s48_s24, 4096  ;;  %p2372_p0 = scmp.lt.s32.totalorder %s48_s24, %s48_s24 }
  0x3c   :  { %p2368_p13 = scmp.ne.s32.totalorder %s48_s24, %s2367_s1  ;;  %p2373_p1 = scmp.lt.s32.totalorder %s2367_s1, %s2367_s1 }
  0x3e   :  { %p2374_p2 = por %p2373_p1, %p2372_p0 }
  0x40   :  { %p2375_p3 = pnand %p2374_p2, %p2368_p13 }
  0x42   :  { %2378 = shalt.err (!%p2375_p3)
}
  0x43   :  { %s2437_s0 = smov 64   ;;  %s2438_s26 = smov 4  }
  0x44   :  { %53 = dma.hbm_to_vmem [thread:$0]  %s2628_s3, 4096, %s48_s24, [#allocation6], %s2437_s0, %s2437_s0, %s2438_s26  }
  0x45   :  { %s2439_s15 = smov [#allocation10]   ;;  %s2379_s21 = scalar_lea.hbm %s2632_s7, 8192 }
  0x46   :  { %s75_s16 = sshll.u32 %s2439_s15, 4  ;;  %p2380_p4 = scmp.ne.s32.totalorder %s2632_s7, %s2379_s21  ;;  %s76_s16 = int_to_ptr.vmem [resolvable:$true] %s75_s16 }
  0x47   :  { %p2383_p5 = scmp.lt.u32.totalorder %s2379_s21, %s2632_s7 }
  0x49   :  { %p2385_p6 = pnand %p2383_p5, %p2380_p4 }
  0x4b   :  { %2388 = shalt.err (!%p2385_p6)
}
  0x4c   :  { %s2389_s19 = scalar_lea.vmem %s76_s16, 8192  ;;  %p2394_p8 = scmp.lt.s32.totalorder %s76_s16, %s76_s16 }
  0x4d   :  { %p2390_p7 = scmp.ne.s32.totalorder %s76_s16, %s2389_s19  ;;  %p2395_p9 = scmp.lt.s32.totalorder %s2389_s19, %s2389_s19 }
  0x4f   :  { %p2396_p10 = por %p2395_p9, %p2394_p8 }
  0x51   :  { %p2397_p11 = pnand %p2396_p10, %p2390_p7 }
  0x53   :  { %2400 = shalt.err (!%p2397_p11)
}
  0x54   :  { %s2440_s3 = smov 128   ;;  %s2441_s20 = smov 8  }
  0x55   :  { %81 = dma.hbm_to_vmem [thread:$0]  %s2632_s7, 8192, %s76_s16, [#allocation9], %s2440_s3, %s2440_s3, %s2441_s20  }
  0x56   :  { %2423 = dma.done.wait [#allocation3], 128  }
  0x57   :  { %2424 = vsyncadd [#allocation3], 4294967168 }
  0x58   :  { %2425 = dma.done.wait [#allocation6], 12288  }
  0x59   :  { %2426 = vsyncadd [#allocation6], 4294955008 }
  0x5a   :  { %2427 = dma.done.wait [#allocation9], 12288  }
  0x5b   :  { %2428 = vsyncadd [#allocation9], 4294955008  ;;  %v2017_v0 = vld [vmem:[#allocation5 + $0x4] ss:$16 sps:$4 sm:$0xff]   ;;  %v2019_v1 = vld [vmem:[#allocation5] ss:$16 sps:$4 sm:$0xff]  }
  0x5c   :  { %517 = vmatprep.subr.bf16.mxu1 %v2017_v0  ;;  %v2020_v2 = vld [vmem:[#allocation5 + $0x24] ss:$16 sps:$4 sm:$0xff]   ;;  %v2022_v3 = vld [vmem:[#allocation5 + $0x20] ss:$16 sps:$4 sm:$0xff]   ;;  %v2554_v13 = vld [vmem:[#allocation2] sm:$0xff]  ;;  %s2443_s12 = smov [#allocation11]  }
  0x5d   :  { %518 = vmatpush1.bf16.msra.mxu1 %v2019_v1  ;;  %v2023_v4 = vld [vmem:[#allocation5 + $0x44] ss:$16 sps:$4 sm:$0xff]   ;;  %v2025_v5 = vld [vmem:[#allocation5 + $0x40] ss:$16 sps:$4 sm:$0xff]   ;;  %v2558_v14 = vcombine.high %v2554_v13, %v2554_v13  ;;  %v2117_v30 = vld [vmem:[#allocation7 + $0x48] sm:$0xff]   ;;  %v2563_v48 = vcombine.low %v2554_v13, %v2554_v13  ;;  %s1746_s13 = sshll.u32 %s2443_s12, 4  ;;  %s1747_s13 = int_to_ptr.vmem [resolvable:$true] %s1746_s13 }
  0x5e   :  { %519 = vmatprep.subr.bf16.mxu1 %v2020_v2  ;;  %v2026_v6 = vld [vmem:[#allocation5 + $0x64] ss:$16 sps:$4 sm:$0xff]   ;;  %v2028_v7 = vld [vmem:[#allocation5 + $0x60] ss:$16 sps:$4 sm:$0xff]   ;;  %v2118_v31 = vld [vmem:[#allocation7 + $0x8] sm:$0xff]   ;;  %s2401_s1 = scalar_lea.vmem %s1747_s13, 128  ;;  %p2406_p13 = scmp.lt.s32.totalorder %s1747_s13, %s1747_s13 }
  0x5f   :  { %v2029_v8 = vld [vmem:[#allocation5 + $0x84] ss:$16 sps:$4 sm:$0xff]   ;;  %v2031_v9 = vld [vmem:[#allocation5 + $0x80] ss:$16 sps:$4 sm:$0xff]   ;;  %549 = vmatprep.mubr.bf16.mxu1 %v2558_v14  ;;  %v2121_v36 = vld [vmem:[#allocation7 + $0x58] sm:$0xff]   ;;  %p2402_p12 = scmp.ne.s32.totalorder %s1747_s13, %s2401_s1  ;;  %p2407_p0 = scmp.lt.s32.totalorder %s2401_s1, %s2401_s1 }
  0x60   :  { %v2032_v10 = vld [vmem:[#allocation5 + $0xa4] ss:$16 sps:$4 sm:$0xff]   ;;  %v2034_v11 = vld [vmem:[#allocation5 + $0xa0] ss:$16 sps:$4 sm:$0xff]   ;;  %v2122_v40 = vld [vmem:[#allocation7 + $0x18] sm:$0xff]  }
  0x61   :  { %520 = vmatpush1.bf16.msra.mxu1 %v2022_v3  ;;  %v2035_v12 = vld [vmem:[#allocation5 + $0xc4] ss:$16 sps:$4 sm:$0xff]   ;;  %v2037_v15 = vld [vmem:[#allocation5 + $0xc0] ss:$16 sps:$4 sm:$0xff]   ;;  %v2125_v44 = vld [vmem:[#allocation7 + $0x68] sm:$0xff]   ;;  %p2408_p1 = por %p2407_p0, %p2406_p13 }
  0x62   :  { %521 = vmatprep.subr.bf16.mxu1 %v2023_v4  ;;  %v2038_v16 = vld [vmem:[#allocation5 + $0xe4] ss:$16 sps:$4 sm:$0xff]   ;;  %v2040_v17 = vld [vmem:[#allocation5 + $0xe0] ss:$16 sps:$4 sm:$0xff]   ;;  %v2069_v45 = vld [vmem:[#allocation5 + $0xc] ss:$16 sps:$4 sm:$0xff]  }
  0x63   :  { %v2041_v18 = vld [vmem:[#allocation5 + $0x104] ss:$16 sps:$4 sm:$0xff]   ;;  %v2043_v19 = vld [vmem:[#allocation5 + $0x100] ss:$16 sps:$4 sm:$0xff]   ;;  %v2126_v46 = vld [vmem:[#allocation7 + $0x28] sm:$0xff]   ;;  %p2409_p2 = pnand %p2408_p1, %p2402_p12 }
  0x64   :  { %v2044_v20 = vld [vmem:[#allocation5 + $0x124] ss:$16 sps:$4 sm:$0xff]   ;;  %v2046_v21 = vld [vmem:[#allocation5 + $0x120] ss:$16 sps:$4 sm:$0xff]   ;;  %v2067_v47 = vld [vmem:[#allocation5 + $0x8] ss:$16 sps:$4 sm:$0xff]  }
  0x65   :  { %522 = vmatpush1.bf16.msra.mxu1 %v2025_v5  ;;  %v2047_v22 = vld [vmem:[#allocation5 + $0x144] ss:$16 sps:$4 sm:$0xff]   ;;  %v2049_v23 = vld [vmem:[#allocation5 + $0x140] ss:$16 sps:$4 sm:$0xff]   ;;  %v2072_v49 = vld [vmem:[#allocation5 + $0x2c] ss:$16 sps:$4 sm:$0xff]  }
  0x66   :  { %523 = vmatprep.subr.bf16.mxu1 %v2026_v6  ;;  %v2050_v24 = vld [vmem:[#allocation5 + $0x164] ss:$16 sps:$4 sm:$0xff]   ;;  %v2052_v25 = vld [vmem:[#allocation5 + $0x160] ss:$16 sps:$4 sm:$0xff]   ;;  %v2070_v50 = vld [vmem:[#allocation5 + $0x28] ss:$16 sps:$4 sm:$0xff]  }
  0x67   :  { %v2053_v26 = vld [vmem:[#allocation5 + $0x184] ss:$16 sps:$4 sm:$0xff]   ;;  %v2055_v29 = vld [vmem:[#allocation5 + $0x180] ss:$16 sps:$4 sm:$0xff]   ;;  %v2075_v51 = vld [vmem:[#allocation5 + $0x4c] ss:$16 sps:$4 sm:$0xff]  }
  0x68   :  { %v2115_v27 = vld [vmem:[#allocation7 + $0x40] sm:$0xff]   ;;  %v2119_v32 = vld [vmem:[#allocation7 + $0x50] sm:$0xff]   ;;  %v2073_v52 = vld [vmem:[#allocation5 + $0x48] ss:$16 sps:$4 sm:$0xff]  }
  0x69   :  { %524 = vmatpush1.bf16.msra.mxu1 %v2028_v7  ;;  %v2116_v28 = vld [vmem:[#allocation7] sm:$0xff]   ;;  %1954 = vmatprep.subr.bf16.mxu0 %v2115_v27  ;;  %v2120_v35 = vld [vmem:[#allocation7 + $0x10] sm:$0xff]   ;;  %v2078_v53 = vld [vmem:[#allocation5 + $0x6c] ss:$16 sps:$4 sm:$0xff]  }
  0x6a   :  { %525 = vmatprep.subr.bf16.mxu1 %v2029_v8  ;;  %1955 = vmatpush3.bf16.msra.mxu0 %v2116_v28  ;;  %v2056_v33 = vld [vmem:[#allocation5 + $0x1a4] ss:$16 sps:$4 sm:$0xff]   ;;  %v2058_v34 = vld [vmem:[#allocation5 + $0x1a0] ss:$16 sps:$4 sm:$0xff]   ;;  %v2076_v54 = vld [vmem:[#allocation5 + $0x68] ss:$16 sps:$4 sm:$0xff]  }
  0x6b   :  { %1956 = vmatprep.subr.bf16.mxu0 %v2117_v30  ;;  %v2059_v37 = vld [vmem:[#allocation5 + $0x1c4] ss:$16 sps:$4 sm:$0xff]   ;;  %v2061_v38 = vld [vmem:[#allocation5 + $0x1c0] ss:$16 sps:$4 sm:$0xff]   ;;  %v2081_v55 = vld [vmem:[#allocation5 + $0x8c] ss:$16 sps:$4 sm:$0xff]  }
  0x6c   :  { %v2062_v39 = vld [vmem:[#allocation5 + $0x1e4] ss:$16 sps:$4 sm:$0xff]   ;;  %v2064_v43 = vld [vmem:[#allocation5 + $0x1e0] ss:$16 sps:$4 sm:$0xff]   ;;  %v2079_v56 = vld [vmem:[#allocation5 + $0x88] ss:$16 sps:$4 sm:$0xff]  }
  0x6d   :  { %526 = vmatpush1.bf16.msra.mxu1 %v2031_v9  ;;  %v2123_v41 = vld [vmem:[#allocation7 + $0x60] sm:$0xff]   ;;  %v2084_v57 = vld [vmem:[#allocation5 + $0xac] ss:$16 sps:$4 sm:$0xff]   ;;  %v2082_v58 = vld [vmem:[#allocation5 + $0xa8] ss:$16 sps:$4 sm:$0xff]  }
  0x6e   :  { %527 = vmatprep.subr.bf16.mxu1 %v2032_v10  ;;  %1957 = vmatpush3.bf16.msra.mxu0 %v2118_v31  ;;  %v2124_v42 = vld [vmem:[#allocation7 + $0x20] sm:$0xff]   ;;  %v2087_v59 = vld [vmem:[#allocation5 + $0xcc] ss:$16 sps:$4 sm:$0xff]   ;;  %v2085_v60 = vld [vmem:[#allocation5 + $0xc8] ss:$16 sps:$4 sm:$0xff]  }
  0x6f   :  { %1958 = vmatprep.subr.bf16.mxu0 %v2119_v32  ;;  %v2090_v61 = vld [vmem:[#allocation5 + $0xec] ss:$16 sps:$4 sm:$0xff]   ;;  %v2088_v62 = vld [vmem:[#allocation5 + $0xe8] ss:$16 sps:$4 sm:$0xff]   ;;  %v2139_v27 = vld [vmem:[#allocation7 + $0xe0] sm:$0xff]  }
  0x70   :  { %v2093_v63 = vld [vmem:[#allocation5 + $0x10c] ss:$16 sps:$4 sm:$0xff]   ;;  %v2091_v0 = vld [vmem:[#allocation5 + $0x108] ss:$16 sps:$4 sm:$0xff]   ;;  %v2140_v28 = vld [vmem:[#allocation7 + $0xa0] sm:$0xff]  }
  0x71   :  { %528 = vmatpush1.bf16.msra.mxu1 %v2034_v11  ;;  %v2096_v1 = vld [vmem:[#allocation5 + $0x12c] ss:$16 sps:$4 sm:$0xff]   ;;  %v2094_v2 = vld [vmem:[#allocation5 + $0x128] ss:$16 sps:$4 sm:$0xff]   ;;  %v2143_v31 = vld [vmem:[#allocation7 + $0xf0] sm:$0xff]  }
  0x72   :  { %529 = vmatprep.subr.bf16.mxu1 %v2035_v12  ;;  %1959 = vmatpush3.bf16.msra.mxu0 %v2120_v35  ;;  %v2099_v3 = vld [vmem:[#allocation5 + $0x14c] ss:$16 sps:$4 sm:$0xff]   ;;  %v2097_v4 = vld [vmem:[#allocation5 + $0x148] ss:$16 sps:$4 sm:$0xff]   ;;  %v2144_v32 = vld [vmem:[#allocation7 + $0xb0] sm:$0xff]   ;;  %v170_v35 = vlaneseq }
  0x73   :  { %1960 = vmatprep.subr.bf16.mxu0 %v2121_v36  ;;  %v2102_v5 = vld [vmem:[#allocation5 + $0x16c] ss:$16 sps:$4 sm:$0xff]   ;;  %v2100_v6 = vld [vmem:[#allocation5 + $0x168] ss:$16 sps:$4 sm:$0xff]  }
  0x74   :  { %v2105_v7 = vld [vmem:[#allocation5 + $0x18c] ss:$16 sps:$4 sm:$0xff]   ;;  %v2103_v8 = vld [vmem:[#allocation5 + $0x188] ss:$16 sps:$4 sm:$0xff]   ;;  %v2568_v36 = vshrl.u32 %v170_v35, 7 }
  0x75   :  { %530 = vmatpush1.bf16.msra.mxu1 %v2037_v15  ;;  %v2108_v9 = vld [vmem:[#allocation5 + $0x1ac] ss:$16 sps:$4 sm:$0xff]   ;;  %v2106_v10 = vld [vmem:[#allocation5 + $0x1a8] ss:$16 sps:$4 sm:$0xff]   ;;  %v2127_v15 = vld [vmem:[#allocation7 + $0x70] sm:$0xff]  }
  0x76   :  { %531 = vmatprep.subr.bf16.mxu1 %v2038_v16  ;;  %1961 = vmatpush3.bf16.msra.mxu0 %v2122_v40  ;;  %v2111_v11 = vld [vmem:[#allocation5 + $0x1cc] ss:$16 sps:$4 sm:$0xff]   ;;  %v2109_v12 = vld [vmem:[#allocation5 + $0x1c8] ss:$16 sps:$4 sm:$0xff]   ;;  %v2128_v16 = vld [vmem:[#allocation7 + $0x30] sm:$0xff]  }
  0x77   :  { %1962 = vmatprep.subr.bf16.mxu0 %v2123_v41  ;;  %v2114_v13 = vld [vmem:[#allocation5 + $0x1ec] ss:$16 sps:$4 sm:$0xff]  }
  0x78   :  { %v2142_v30 = vld [vmem:[#allocation7 + $0xa8] sm:$0xff]  }
  0x79   :  { %532 = vmatpush1.bf16.msra.mxu1 %v2040_v17  ;;  %v2129_v17 = vld [vmem:[#allocation7 + $0x78] sm:$0xff]   ;;  %v2197_v35 = vld [vmem:[#allocation10 + $0x4] ss:$8 sps:$4 sm:$0xff]  }
  0x7a   :  { %533 = vmatprep.subr.bf16.mxu1 %v2041_v18  ;;  %1963 = vmatpush3.bf16.msra.mxu0 %v2124_v42  ;;  %v2130_v18 = vld [vmem:[#allocation7 + $0x38] sm:$0xff]  }
  0x7b   :  { %1964 = vmatprep.subr.bf16.mxu0 %v2125_v44 }
  0x7d   :  { %534 = vmatpush1.bf16.msra.mxu1 %v2043_v19  ;;  %v2131_v19 = vld [vmem:[#allocation7 + $0xc0] sm:$0xff]  }
  0x7e   :  { %535 = vmatprep.subr.bf16.mxu1 %v2044_v20  ;;  %1965 = vmatpush3.bf16.msra.mxu0 %v2126_v46  ;;  %v2132_v20 = vld [vmem:[#allocation7 + $0x80] sm:$0xff]  }
  0x7f   :  { %1966 = vmatprep.subr.bf16.mxu0 %v2127_v15  ;;  %v2170_v15 = vld [vmem:[#allocation8 + $0x6c] ss:$16 sps:$4 sm:$0xff]  }
  0x81   :  { %536 = vmatpush1.bf16.msra.mxu1 %v2046_v21  ;;  %v2133_v21 = vld [vmem:[#allocation7 + $0xc8] sm:$0xff]  }
  0x82   :  { %537 = vmatprep.subr.bf16.mxu1 %v2047_v22  ;;  %1967 = vmatpush3.bf16.msra.mxu0 %v2128_v16  ;;  %v2134_v22 = vld [vmem:[#allocation7 + $0x88] sm:$0xff]   ;;  %v2165_v16 = vld [vmem:[#allocation8 + $0x60] ss:$16 sps:$4 sm:$0xff]  }
  0x83   :  { %1968 = vmatprep.subr.bf16.mxu0 %v2129_v17  ;;  %v2168_v17 = vld [vmem:[#allocation8 + $0x68] ss:$16 sps:$4 sm:$0xff]  }
  0x85   :  { %538 = vmatpush1.bf16.msra.mxu1 %v2049_v23  ;;  %v2135_v23 = vld [vmem:[#allocation7 + $0xd0] sm:$0xff]  }
  0x86   :  { %539 = vmatprep.subr.bf16.mxu1 %v2050_v24  ;;  %1969 = vmatpush3.bf16.msra.mxu0 %v2130_v18  ;;  %v2136_v24 = vld [vmem:[#allocation7 + $0x90] sm:$0xff]  }
  0x87   :  { %v2173_v18 = vld [vmem:[#allocation8 + $0x84] ss:$16 sps:$4 sm:$0xff]  }
  0x89   :  { %540 = vmatpush1.bf16.msra.mxu1 %v2052_v25  ;;  %v2137_v25 = vld [vmem:[#allocation7 + $0xd8] sm:$0xff]  }
  0x8a   :  { %541 = vmatprep.subr.bf16.mxu1 %v2053_v26  ;;  %v2138_v26 = vld [vmem:[#allocation7 + $0x98] sm:$0xff]  }
  0x8d   :  { %542 = vmatpush1.bf16.msra.mxu1 %v2055_v29  ;;  %v2141_v29 = vld [vmem:[#allocation7 + $0xe8] sm:$0xff]  }
  0x8e   :  { %543 = vmatprep.subr.bf16.mxu1 %v2056_v33  ;;  %v2145_v33 = vld [vmem:[#allocation7 + $0xf8] sm:$0xff]  }
  0x91   :  { %544 = vmatpush1.bf16.msra.mxu1 %v2058_v34  ;;  %v2146_v34 = vld [vmem:[#allocation7 + $0xb8] sm:$0xff]  }
  0x92   :  { %545 = vmatprep.subr.bf16.mxu1 %v2059_v37  ;;  %v2571_v37 = vsub.s32 0, %v2568_v36 }
  0x95   :  { %546 = vmatpush1.bf16.msra.mxu1 %v2061_v38  ;;  %v100_v38 = vld [vmem:[%s2627_s2] sm:$0xf] }
  0x96   :  { %547 = vmatprep.subr.bf16.mxu1 %v2062_v39  ;;  %v2577_v39 = vsub.s32 1, %v2568_v36  ;;  %v173_v40 = vrot.slane %v100_v38, %v2571_v37 }
  0x98   :  { %v177_v41 = vrot.slane %v100_v38, %v2577_v39 }
  0x99   :  { %548 = vmatpush1.bf16.msra.mxu1 %v2064_v43 }
  0x9a   :  { %558 = vmatprep.subr.bf16.mxu1 %v2069_v45 }
  0x9c   :  { %550 = vmatmul.mubr.bf16.vlgmr.msra.gmra.mrb[0].mxu1 %v2563_v48 }
  0x9d   :  { %559 = vmatpush1.bf16.msra.mxu1 %v2067_v47  ;;  %590 = vmatprep.mubr.bf16.mxu1 %v2558_v14  ;;  %v2112_v14 = vld [vmem:[#allocation5 + $0x1e8] ss:$16 sps:$4 sm:$0xff]  }
  0x9e   :  { %560 = vmatprep.subr.bf16.mxu1 %v2072_v49 }
  0xa1   :  { %561 = vmatpush1.bf16.msra.mxu1 %v2070_v50 }
  0xa2   :  { %562 = vmatprep.subr.bf16.mxu1 %v2075_v51 }
  0xa5   :  { %563 = vmatpush1.bf16.msra.mxu1 %v2073_v52  ;;  %v180_v52 = vsub.s32 2, %v2568_v36 }
  0xa6   :  { %564 = vmatprep.subr.bf16.mxu1 %v2078_v53  ;;  %v184_v53 = vsub.s32 3, %v2568_v36  ;;  %v103_v36 = vld [vmem:[%s2633_s8] sm:$0x3] }
  0xa9   :  { %565 = vmatpush1.bf16.msra.mxu1 %v2076_v54  ;;  %v181_v54 = vrot.slane %v100_v38, %v180_v52 }
  0xaa   :  { %566 = vmatprep.subr.bf16.mxu1 %v2081_v55  ;;  %v185_v55 = vrot.slane %v100_v38, %v184_v53 }
  0xad   :  { %567 = vmatpush1.bf16.msra.mxu1 %v2079_v56 }
  0xae   :  { %568 = vmatprep.subr.bf16.mxu1 %v2084_v57 }
  0xb1   :  { %569 = vmatpush1.bf16.msra.mxu1 %v2082_v58 }
  0xb2   :  { %570 = vmatprep.subr.bf16.mxu1 %v2087_v59 }
  0xb5   :  { %571 = vmatpush1.bf16.msra.mxu1 %v2085_v60 }
  0xb6   :  { %572 = vmatprep.subr.bf16.mxu1 %v2090_v61 }
  0xb9   :  { %573 = vmatpush1.bf16.msra.mxu1 %v2088_v62 }
  0xba   :  { %574 = vmatprep.subr.bf16.mxu1 %v2093_v63 }
  0xbd   :  { %575 = vmatpush1.bf16.msra.mxu1 %v2091_v0 }
  0xbe   :  { %576 = vmatprep.subr.bf16.mxu1 %v2096_v1 }
  0xc1   :  { %577 = vmatpush1.bf16.msra.mxu1 %v2094_v2  ;;  %v2147_v2 = vld [vmem:[#allocation8] ss:$16 sps:$4 sm:$0xff]  }
  0xc2   :  { %578 = vmatprep.subr.bf16.mxu1 %v2099_v3  ;;  %v2149_v3 = vld [vmem:[#allocation8 + $0x4] ss:$16 sps:$4 sm:$0xff]  }
  0xc3   :  { %1164 = vmatprep.subr.bf16.mxu0 %v2149_v3  ;;  %v2215_v3 = vld [vmem:[#allocation10 + $0x64] ss:$8 sps:$4 sm:$0xff]  }
  0xc5   :  { %579 = vmatpush1.bf16.msra.mxu1 %v2097_v4  ;;  %v2150_v4 = vld [vmem:[#allocation8 + $0x8] ss:$16 sps:$4 sm:$0xff]  }
  0xc6   :  { %580 = vmatprep.subr.bf16.mxu1 %v2102_v5  ;;  %v2152_v5 = vld [vmem:[#allocation8 + $0xc] ss:$16 sps:$4 sm:$0xff]  }
  0xc9   :  { %581 = vmatpush1.bf16.msra.mxu1 %v2100_v6  ;;  %v2155_v6 = vld [vmem:[#allocation8 + $0x24] ss:$16 sps:$4 sm:$0xff]  }
  0xca   :  { %582 = vmatprep.subr.bf16.mxu1 %v2105_v7  ;;  %v2158_v7 = vld [vmem:[#allocation8 + $0x2c] ss:$16 sps:$4 sm:$0xff]  }
  0xcd   :  { %583 = vmatpush1.bf16.msra.mxu1 %v2103_v8  ;;  %v2153_v8 = vld [vmem:[#allocation8 + $0x20] ss:$16 sps:$4 sm:$0xff]  }
  0xce   :  { %584 = vmatprep.subr.bf16.mxu1 %v2108_v9  ;;  %v2156_v9 = vld [vmem:[#allocation8 + $0x28] ss:$16 sps:$4 sm:$0xff]  }
  0xd1   :  { %585 = vmatpush1.bf16.msra.mxu1 %v2106_v10  ;;  %v2161_v10 = vld [vmem:[#allocation8 + $0x44] ss:$16 sps:$4 sm:$0xff]  }
  0xd2   :  { %586 = vmatprep.subr.bf16.mxu1 %v2111_v11  ;;  %v2164_v11 = vld [vmem:[#allocation8 + $0x4c] ss:$16 sps:$4 sm:$0xff]  }
  0xd5   :  { %587 = vmatpush1.bf16.msra.mxu1 %v2109_v12  ;;  %v2159_v12 = vld [vmem:[#allocation8 + $0x40] ss:$16 sps:$4 sm:$0xff]  }
  0xd6   :  { %588 = vmatprep.subr.bf16.mxu1 %v2114_v13  ;;  %v2162_v13 = vld [vmem:[#allocation8 + $0x48] ss:$16 sps:$4 sm:$0xff]  }
  0xd9   :  { %589 = vmatpush1.bf16.msra.mxu1 %v2112_v14  ;;  %v2167_v14 = vld [vmem:[#allocation8 + $0x64] ss:$16 sps:$4 sm:$0xff]  }
  0xda   :  { %1976 = vmatprep.subr.bf16.mxu1 %v2131_v19  ;;  %v2176_v19 = vld [vmem:[#allocation8 + $0x8c] ss:$16 sps:$4 sm:$0xff]  }
  0xdc   :  { %591 = vmatmul.mubr.bf16.vlgmr.msra.gmra.mrb[4].mxu1 %v2563_v48 }
  0xdd   :  { %1977 = vmatpush3.bf16.msra.mxu1 %v2132_v20  ;;  %v2171_v20 = vld [vmem:[#allocation8 + $0x80] ss:$16 sps:$4 sm:$0xff]  }
  0xde   :  { %1978 = vmatprep.subr.bf16.mxu1 %v2133_v21  ;;  %v2174_v21 = vld [vmem:[#allocation8 + $0x88] ss:$16 sps:$4 sm:$0xff]  }
  0xe1   :  { %1979 = vmatpush3.bf16.msra.mxu1 %v2134_v22  ;;  %v2179_v22 = vld [vmem:[#allocation8 + $0xa4] ss:$16 sps:$4 sm:$0xff]  }
  0xe2   :  { %1980 = vmatprep.subr.bf16.mxu1 %v2135_v23  ;;  %v2182_v23 = vld [vmem:[#allocation8 + $0xac] ss:$16 sps:$4 sm:$0xff]  }
  0xe5   :  { %1981 = vmatpush3.bf16.msra.mxu1 %v2136_v24  ;;  %v2177_v24 = vld [vmem:[#allocation8 + $0xa0] ss:$16 sps:$4 sm:$0xff]  }
  0xe6   :  { %1982 = vmatprep.subr.bf16.mxu1 %v2137_v25  ;;  %v2180_v25 = vld [vmem:[#allocation8 + $0xa8] ss:$16 sps:$4 sm:$0xff]  }
  0xe9   :  { %1983 = vmatpush3.bf16.msra.mxu1 %v2138_v26  ;;  %v2185_v26 = vld [vmem:[#allocation8 + $0xc4] ss:$16 sps:$4 sm:$0xff]  }
  0xea   :  { %1984 = vmatprep.subr.bf16.mxu1 %v2139_v27  ;;  %v2188_v27 = vld [vmem:[#allocation8 + $0xcc] ss:$16 sps:$4 sm:$0xff]  }
  0xed   :  { %1985 = vmatpush3.bf16.msra.mxu1 %v2140_v28  ;;  %v2183_v28 = vld [vmem:[#allocation8 + $0xc0] ss:$16 sps:$4 sm:$0xff]  }
  0xee   :  { %1986 = vmatprep.subr.bf16.mxu1 %v2141_v29  ;;  %v2186_v29 = vld [vmem:[#allocation8 + $0xc8] ss:$16 sps:$4 sm:$0xff]  }
  0xf1   :  { %1987 = vmatpush3.bf16.msra.mxu1 %v2142_v30  ;;  %v2191_v30 = vld [vmem:[#allocation8 + $0xe4] ss:$16 sps:$4 sm:$0xff]  }
  0xf2   :  { %1988 = vmatprep.subr.bf16.mxu1 %v2143_v31  ;;  %v2194_v31 = vld [vmem:[#allocation8 + $0xec] ss:$16 sps:$4 sm:$0xff]  }
  0xf5   :  { %1989 = vmatpush3.bf16.msra.mxu1 %v2144_v32  ;;  %v2189_v32 = vld [vmem:[#allocation8 + $0xe0] ss:$16 sps:$4 sm:$0xff]  }
  0xf6   :  { %1990 = vmatprep.subr.bf16.mxu1 %v2145_v33  ;;  %v2192_v33 = vld [vmem:[#allocation8 + $0xe8] ss:$16 sps:$4 sm:$0xff]  }
  0xf9   :  { %1991 = vmatpush3.bf16.msra.mxu1 %v2146_v34  ;;  %v2442_v34 = vmov 0  }
  0xfa   :  { %1205 = vmatprep.subr.bf16.mxu1 %v2152_v5  ;;  %v2218_v5 = vld [vmem:[#allocation10 + $0x74] ss:$8 sps:$4 sm:$0xff]  }
 0x16f   :  { %v551_v42 = vpop.f32.mrb[0].mxu1 }
 0x170   :  { %v552_v43 = vadd.f32 %v551_v42, %v173_v40  ;;  %v553_v44 = vpop.f32.mrb[1].mxu1 }
 0x171   :  { %v554_v45 = vadd.f32 %v553_v44, %v177_v41  ;;  %v555_v46 = vpop.f32.mrb[2].mxu1  ;;  %v1823_v44 = vld [vmem:[%s2629_s4] ss:$0 sm:$0xff] }
 0x172   :  { %v599_v47 = vmax.f32 %v552_v43, 0.0  ;;  %v556_v48 = vpop.f32.mrb[3].mxu1 }
 0x173   :  { %v600_v49 = vmax.f32 %v554_v45, 0.0 }
 0x174   :  { %v603_v50 = vpack.c.bf16 %v599_v47, %v599_v47 }
 0x175   :  { %v604_v51 = vpack.c.bf16 %v600_v49, %v600_v49 }
 0x177   :  { %901 = vmatprep.mubr.bf16.mxu0 %v604_v51 }
 0x178   :  { %902 = vmatmul.mubr.bf16.vlgmr.msra.gmra.mrb[0].mxu0 %v603_v50 }
 0x179   :  { %1165 = vmatpush1.bf16.msra.mxu0 %v2147_v2  ;;  %1196 = vmatprep.mubr.bf16.mxu0 %v2442_v34  ;;  %v2210_v2 = vld [vmem:[#allocation10 + $0x50] ss:$8 sps:$4 sm:$0xff]  }
 0x17a   :  { %1166 = vmatprep.subr.bf16.mxu0 %v2155_v6  ;;  %v2216_v6 = vld [vmem:[#allocation10 + $0x70] ss:$8 sps:$4 sm:$0xff]  }
 0x17d   :  { %1167 = vmatpush1.bf16.msra.mxu0 %v2153_v8  ;;  %v2219_v8 = vld [vmem:[#allocation10 + $0x80] ss:$8 sps:$4 sm:$0xff]  }
 0x17e   :  { %1168 = vmatprep.subr.bf16.mxu0 %v2161_v10  ;;  %v2222_v10 = vld [vmem:[#allocation10 + $0x90] ss:$8 sps:$4 sm:$0xff]  }
 0x181   :  { %1169 = vmatpush1.bf16.msra.mxu0 %v2159_v12  ;;  %v2225_v12 = vld [vmem:[#allocation10 + $0xa0] ss:$8 sps:$4 sm:$0xff]  }
 0x182   :  { %1170 = vmatprep.subr.bf16.mxu0 %v2167_v14  ;;  %v2228_v14 = vld [vmem:[#allocation10 + $0xb0] ss:$8 sps:$4 sm:$0xff]  }
 0x185   :  { %1171 = vmatpush1.bf16.msra.mxu0 %v2165_v16  ;;  %v2231_v16 = vld [vmem:[#allocation10 + $0xc0] ss:$8 sps:$4 sm:$0xff]  }
 0x186   :  { %1172 = vmatprep.subr.bf16.mxu0 %v2173_v18  ;;  %v2234_v18 = vld [vmem:[#allocation10 + $0xd0] ss:$8 sps:$4 sm:$0xff]  }
 0x189   :  { %1173 = vmatpush1.bf16.msra.mxu0 %v2171_v20  ;;  %v2237_v20 = vld [vmem:[#allocation10 + $0xe0] ss:$8 sps:$4 sm:$0xff]  }
 0x18a   :  { %1174 = vmatprep.subr.bf16.mxu0 %v2179_v22  ;;  %v2240_v22 = vld [vmem:[#allocation10 + $0xf0] ss:$8 sps:$4 sm:$0xff]  }
 0x18d   :  { %1175 = vmatpush1.bf16.msra.mxu0 %v2177_v24  ;;  %v2593_v24 = vld [vmem:[%s2631_s6] sm:$0xf] }
 0x18e   :  { %1176 = vmatprep.subr.bf16.mxu0 %v2185_v26  ;;  %v991_v26 = vrot.slane %v2593_v24, %v2577_v39 }
 0x191   :  { %1177 = vmatpush1.bf16.msra.mxu0 %v2183_v28 }
 0x192   :  { %1178 = vmatprep.subr.bf16.mxu0 %v2191_v30 }
 0x195   :  { %1179 = vmatpush1.bf16.msra.mxu0 %v2189_v32 }
 0x196   :  { %1649 = vmatprep.subr.bf16.mxu0 %v2197_v35 }
 0x1af   :  { %v592_v56 = vpop.f32.mrb[4].mxu1 }
 0x1b0   :  { %v593_v57 = vadd.f32 %v592_v56, %v181_v54  ;;  %v594_v58 = vpop.f32.mrb[5].mxu1 }
 0x1b1   :  { %v595_v59 = vadd.f32 %v594_v58, %v185_v55  ;;  %v596_v60 = vpop.f32.mrb[6].mxu1  ;;  %v2195_v55 = vld [vmem:[#allocation10] ss:$8 sps:$4 sm:$0xff]   ;;  %v2198_v58 = vld [vmem:[#allocation10 + $0x10] ss:$8 sps:$4 sm:$0xff]  }
 0x1b2   :  { %v601_v61 = vmax.f32 %v593_v57, 0.0  ;;  %v597_v62 = vpop.f32.mrb[7].mxu1  ;;  %v2200_v57 = vld [vmem:[#allocation10 + $0x14] ss:$8 sps:$4 sm:$0xff]   ;;  %v2201_v60 = vld [vmem:[#allocation10 + $0x20] ss:$8 sps:$4 sm:$0xff]  }
 0x1b3   :  { %v602_v63 = vmax.f32 %v595_v59, 0.0  ;;  %v2203_v59 = vld [vmem:[#allocation10 + $0x24] ss:$8 sps:$4 sm:$0xff]   ;;  %v2204_v62 = vld [vmem:[#allocation10 + $0x30] ss:$8 sps:$4 sm:$0xff]  }
 0x1b4   :  { %v605_v1 = vpack.c.bf16 %v601_v61, %v601_v61  ;;  %v2206_v61 = vld [vmem:[#allocation10 + $0x34] ss:$8 sps:$4 sm:$0xff]  }
 0x1b5   :  { %v606_v0 = vpack.c.bf16 %v602_v63, %v602_v63  ;;  %v2209_v63 = vld [vmem:[#allocation10 + $0x44] ss:$8 sps:$4 sm:$0xff]  }
 0x1b7   :  { %941 = vmatprep.mubr.bf16.mxu1 %v606_v0  ;;  %v2207_v0 = vld [vmem:[#allocation10 + $0x40] ss:$8 sps:$4 sm:$0xff]  }
 0x1b8   :  { %942 = vmatmul.mubr.bf16.vlgmr.msra.gmra.mrb[8].mxu1 %v605_v1  ;;  %v2212_v1 = vld [vmem:[#allocation10 + $0x54] ss:$8 sps:$4 sm:$0xff]  }
 0x1b9   :  { %1206 = vmatpush1.bf16.msra.mxu1 %v2150_v4  ;;  %1237 = vmatprep.mubr.bf16.mxu1 %v2442_v34  ;;  %v2213_v4 = vld [vmem:[#allocation10 + $0x60] ss:$8 sps:$4 sm:$0xff]  }
 0x1ba   :  { %1207 = vmatprep.subr.bf16.mxu1 %v2158_v7  ;;  %v2221_v7 = vld [vmem:[#allocation10 + $0x84] ss:$8 sps:$4 sm:$0xff]  }
 0x1bd   :  { %1208 = vmatpush1.bf16.msra.mxu1 %v2156_v9  ;;  %v2224_v9 = vld [vmem:[#allocation10 + $0x94] ss:$8 sps:$4 sm:$0xff]  }
 0x1be   :  { %1209 = vmatprep.subr.bf16.mxu1 %v2164_v11  ;;  %v2227_v11 = vld [vmem:[#allocation10 + $0xa4] ss:$8 sps:$4 sm:$0xff]  }
 0x1c1   :  { %1210 = vmatpush1.bf16.msra.mxu1 %v2162_v13  ;;  %v2230_v13 = vld [vmem:[#allocation10 + $0xb4] ss:$8 sps:$4 sm:$0xff]  }
 0x1c2   :  { %1211 = vmatprep.subr.bf16.mxu1 %v2170_v15  ;;  %v2233_v15 = vld [vmem:[#allocation10 + $0xc4] ss:$8 sps:$4 sm:$0xff]  }
 0x1c5   :  { %1212 = vmatpush1.bf16.msra.mxu1 %v2168_v17  ;;  %v2236_v17 = vld [vmem:[#allocation10 + $0xd4] ss:$8 sps:$4 sm:$0xff]  }
 0x1c6   :  { %1213 = vmatprep.subr.bf16.mxu1 %v2176_v19  ;;  %v2239_v19 = vld [vmem:[#allocation10 + $0xe4] ss:$8 sps:$4 sm:$0xff]  }
 0x1c9   :  { %1214 = vmatpush1.bf16.msra.mxu1 %v2174_v21  ;;  %v2242_v21 = vld [vmem:[#allocation10 + $0xf4] ss:$8 sps:$4 sm:$0xff]  }
 0x1ca   :  { %1215 = vmatprep.subr.bf16.mxu1 %v2182_v23  ;;  %v2245_v23 = vld [vmem:[#allocation10 + $0x104] ss:$8 sps:$4 sm:$0xff]  }
 0x1cd   :  { %1216 = vmatpush1.bf16.msra.mxu1 %v2180_v25  ;;  %v987_v25 = vrot.slane %v2593_v24, %v2571_v37 }
 0x1ce   :  { %1217 = vmatprep.subr.bf16.mxu1 %v2188_v27  ;;  %v999_v27 = vrot.slane %v2593_v24, %v184_v53 }
 0x1d1   :  { %1218 = vmatpush1.bf16.msra.mxu1 %v2186_v29 }
 0x1d2   :  { %1219 = vmatprep.subr.bf16.mxu1 %v2194_v31 }
 0x1d5   :  { %1220 = vmatpush1.bf16.msra.mxu1 %v2192_v33 }
 0x24b   :  { %v1970_v38 = vpop.f32.mrb[0].mxu0 }
 0x24c   :  { %v1971_v40 = vpop.f32.mrb[1].mxu0 }
 0x24d   :  { %v1972_v41 = vadd.f32 %v1971_v40, %v1970_v38  ;;  %v1973_v42 = vpop.f32.mrb[2].mxu0 }
 0x24e   :  { %v1974_v43 = vpop.f32.mrb[3].mxu0 }
 0x24f   :  { %v904_v47 = vadd.f32 %v1972_v41, %v1823_v44 }
 0x28b   :  { %v1992_v45 = vpop.f32.mrb[8].mxu1 }
 0x28c   :  { %v1993_v46 = vpop.f32.mrb[9].mxu1 }
 0x28d   :  { %v1994_v48 = vadd.f32 %v1993_v46, %v1992_v45  ;;  %v1995_v49 = vpop.f32.mrb[10].mxu1  ;;  %v2243_v46 = vld [vmem:[#allocation10 + $0x100] ss:$8 sps:$4 sm:$0xff]  }
 0x28e   :  { %v1996_v50 = vpop.f32.mrb[11].mxu1  ;;  %v2246_v49 = vld [vmem:[#allocation10 + $0x110] ss:$8 sps:$4 sm:$0xff]  }
 0x28f   :  { %v944_v51 = vadd.f32 %v1994_v48, %v904_v47  ;;  %v2248_v48 = vld [vmem:[#allocation10 + $0x114] ss:$8 sps:$4 sm:$0xff]   ;;  %v2251_v50 = vld [vmem:[#allocation10 + $0x124] ss:$8 sps:$4 sm:$0xff]  }
 0x291   :  { %v949_v54 = vmax.f32 %v944_v51, 0.0  ;;  %v2249_v51 = vld [vmem:[#allocation10 + $0x120] ss:$8 sps:$4 sm:$0xff]  }
 0x293   :  { %v950_v56 = vpack.c.bf16 %v949_v54, %v949_v54  ;;  %v2254_v54 = vld [vmem:[#allocation10 + $0x134] ss:$8 sps:$4 sm:$0xff]  }
 0x295   :  { %1197 = vmatmul.mubr.bf16.vlgmr.msra.gmra.mrb[4].mxu0 %v950_v56  ;;  %1238 = vmatmul.mubr.bf16.vlgmr.msra.gmra.mrb[12].mxu1 %v950_v56  ;;  %v2257_v56 = vld [vmem:[#allocation10 + $0x144] ss:$8 sps:$4 sm:$0xff]  }
 0x296   :  { %1650 = vmatpush1.bf16.msra.mxu0 %v2195_v55  ;;  %v2252_v55 = vld [vmem:[#allocation10 + $0x130] ss:$8 sps:$4 sm:$0xff]  }
 0x297   :  { %1651 = vmatprep.subr.bf16.mxu0 %v2200_v57  ;;  %v2255_v57 = vld [vmem:[#allocation10 + $0x140] ss:$8 sps:$4 sm:$0xff]  }
 0x29a   :  { %1652 = vmatpush1.bf16.msra.mxu0 %v2198_v58  ;;  %v2260_v58 = vld [vmem:[#allocation10 + $0x154] ss:$8 sps:$4 sm:$0xff]  }
 0x29b   :  { %1653 = vmatprep.subr.bf16.mxu0 %v2203_v59  ;;  %v2258_v59 = vld [vmem:[#allocation10 + $0x150] ss:$8 sps:$4 sm:$0xff]  }
 0x29e   :  { %1654 = vmatpush1.bf16.msra.mxu0 %v2201_v60  ;;  %v2263_v60 = vld [vmem:[#allocation10 + $0x164] ss:$8 sps:$4 sm:$0xff]  }
 0x29f   :  { %1655 = vmatprep.subr.bf16.mxu0 %v2206_v61  ;;  %v2261_v61 = vld [vmem:[#allocation10 + $0x160] ss:$8 sps:$4 sm:$0xff]  }
 0x2a2   :  { %1656 = vmatpush1.bf16.msra.mxu0 %v2204_v62  ;;  %v2266_v62 = vld [vmem:[#allocation10 + $0x174] ss:$8 sps:$4 sm:$0xff]  }
 0x2a3   :  { %1657 = vmatprep.subr.bf16.mxu0 %v2209_v63  ;;  %v2264_v63 = vld [vmem:[#allocation10 + $0x170] ss:$8 sps:$4 sm:$0xff]  }
 0x2a6   :  { %1658 = vmatpush1.bf16.msra.mxu0 %v2207_v0  ;;  %v2269_v0 = vld [vmem:[#allocation10 + $0x184] ss:$8 sps:$4 sm:$0xff]  }
 0x2a7   :  { %1659 = vmatprep.subr.bf16.mxu0 %v2212_v1  ;;  %v2267_v1 = vld [vmem:[#allocation10 + $0x180] ss:$8 sps:$4 sm:$0xff]  }
 0x2aa   :  { %1660 = vmatpush1.bf16.msra.mxu0 %v2210_v2  ;;  %v2272_v2 = vld [vmem:[#allocation10 + $0x194] ss:$8 sps:$4 sm:$0xff]  }
 0x2ab   :  { %1661 = vmatprep.subr.bf16.mxu0 %v2215_v3  ;;  %v2270_v3 = vld [vmem:[#allocation10 + $0x190] ss:$8 sps:$4 sm:$0xff]  }
 0x2ae   :  { %1662 = vmatpush1.bf16.msra.mxu0 %v2213_v4  ;;  %v2275_v4 = vld [vmem:[#allocation10 + $0x1a4] ss:$8 sps:$4 sm:$0xff]  }
 0x2af   :  { %1663 = vmatprep.subr.bf16.mxu0 %v2218_v5  ;;  %v2273_v5 = vld [vmem:[#allocation10 + $0x1a0] ss:$8 sps:$4 sm:$0xff]  }
 0x2b2   :  { %1664 = vmatpush1.bf16.msra.mxu0 %v2216_v6  ;;  %v2278_v6 = vld [vmem:[#allocation10 + $0x1b4] ss:$8 sps:$4 sm:$0xff]  }
 0x2b3   :  { %1665 = vmatprep.subr.bf16.mxu0 %v2221_v7  ;;  %v2276_v7 = vld [vmem:[#allocation10 + $0x1b0] ss:$8 sps:$4 sm:$0xff]  }
 0x2b6   :  { %1666 = vmatpush1.bf16.msra.mxu0 %v2219_v8  ;;  %v2281_v8 = vld [vmem:[#allocation10 + $0x1c4] ss:$8 sps:$4 sm:$0xff]  }
 0x2b7   :  { %1667 = vmatprep.subr.bf16.mxu0 %v2224_v9  ;;  %v2279_v9 = vld [vmem:[#allocation10 + $0x1c0] ss:$8 sps:$4 sm:$0xff]  }
 0x2ba   :  { %1668 = vmatpush1.bf16.msra.mxu0 %v2222_v10  ;;  %v2284_v10 = vld [vmem:[#allocation10 + $0x1d4] ss:$8 sps:$4 sm:$0xff]  }
 0x2bb   :  { %1669 = vmatprep.subr.bf16.mxu0 %v2227_v11  ;;  %v2282_v11 = vld [vmem:[#allocation10 + $0x1d0] ss:$8 sps:$4 sm:$0xff]  }
 0x2be   :  { %1670 = vmatpush1.bf16.msra.mxu0 %v2225_v12  ;;  %v995_v12 = vrot.slane %v2593_v24, %v180_v52  ;;  %v1322_v52 = vrot.slane %v103_v36, %v2571_v37 }
 0x2bf   :  { %1671 = vmatprep.subr.bf16.mxu0 %v2230_v13  ;;  %v2287_v13 = vld [vmem:[#allocation10 + $0x1e4] ss:$8 sps:$4 sm:$0xff]  }
 0x2c2   :  { %1672 = vmatpush1.bf16.msra.mxu0 %v2228_v14  ;;  %v2285_v14 = vld [vmem:[#allocation10 + $0x1e0] ss:$8 sps:$4 sm:$0xff]  }
 0x2c3   :  { %1673 = vmatprep.subr.bf16.mxu0 %v2233_v15 }
 0x2c6   :  { %1674 = vmatpush1.bf16.msra.mxu0 %v2231_v16  ;;  %v2290_v16 = vld [vmem:[#allocation10 + $0x1f4] ss:$8 sps:$4 sm:$0xff]  }
 0x2c7   :  { %1675 = vmatprep.subr.bf16.mxu0 %v2236_v17  ;;  %v2288_v17 = vld [vmem:[#allocation10 + $0x1f0] ss:$8 sps:$4 sm:$0xff]  }
 0x2ca   :  { %1676 = vmatpush1.bf16.msra.mxu0 %v2234_v18 }
 0x2cb   :  { %1677 = vmatprep.subr.bf16.mxu0 %v2239_v19 }
 0x2ce   :  { %1678 = vmatpush1.bf16.msra.mxu0 %v2237_v20  ;;  %v1326_v20 = vrot.slane %v103_v36, %v2577_v39 }
 0x2cf   :  { %1679 = vmatprep.subr.bf16.mxu0 %v2242_v21 }
 0x2d2   :  { %1680 = vmatpush1.bf16.msra.mxu0 %v2240_v22 }
 0x2d3   :  { %1690 = vmatprep.subr.bf16.mxu0 %v2245_v23 }
 0x368   :  { %v1198_v28 = vpop.f32.mrb[4].mxu0  ;;  %v2602_v29 = vpop.f32.mrb[12].mxu1 }
 0x369   :  { %v1199_v30 = vadd.f32 %v1198_v28, %v987_v25  ;;  %v1200_v31 = vpop.f32.mrb[5].mxu0  ;;  %v1241_v32 = vpop.f32.mrb[13].mxu1  ;;  %v1240_v15 = vadd.f32 %v2602_v29, %v995_v12 }
 0x36a   :  { %v1201_v33 = vadd.f32 %v1200_v31, %v991_v26  ;;  %v1242_v34 = vadd.f32 %v1241_v32, %v999_v27  ;;  %v1202_v35 = vpop.f32.mrb[6].mxu0  ;;  %v1243_v38 = vpop.f32.mrb[14].mxu1 }
 0x36b   :  { %v1246_v40 = vmax.f32 %v1199_v30, 0.0  ;;  %v1203_v41 = vpop.f32.mrb[7].mxu0  ;;  %v1244_v42 = vpop.f32.mrb[15].mxu1  ;;  %v1248_v18 = vmax.f32 %v1240_v15, 0.0 }
 0x36c   :  { %v1247_v43 = vmax.f32 %v1201_v33, 0.0  ;;  %v1249_v44 = vmax.f32 %v1242_v34, 0.0 }
 0x36d   :  { %v1250_v47 = vpack.c.bf16 %v1246_v40, %v1246_v40  ;;  %v1252_v19 = vpack.c.bf16 %v1248_v18, %v1248_v18 }
 0x36e   :  { %v1251_v45 = vpack.c.bf16 %v1247_v43, %v1247_v43  ;;  %v1253_v53 = vpack.c.bf16 %v1249_v44, %v1249_v44 }
 0x370   :  { %1681 = vmatprep.mubr.bf16.mxu0 %v1251_v45 }
 0x371   :  { %1682 = vmatmul.mubr.bf16.vlgmr.msra.gmra.mrb[8].mxu0 %v1250_v47 }
 0x372   :  { %1691 = vmatpush1.bf16.msra.mxu0 %v2243_v46  ;;  %1722 = vmatprep.mubr.bf16.mxu0 %v1253_v53 }
 0x373   :  { %1692 = vmatprep.subr.bf16.mxu0 %v2248_v48 }
 0x376   :  { %1693 = vmatpush1.bf16.msra.mxu0 %v2246_v49 }
 0x377   :  { %1694 = vmatprep.subr.bf16.mxu0 %v2251_v50 }
 0x37a   :  { %1695 = vmatpush1.bf16.msra.mxu0 %v2249_v51 }
 0x37b   :  { %1696 = vmatprep.subr.bf16.mxu0 %v2254_v54 }
 0x37e   :  { %1697 = vmatpush1.bf16.msra.mxu0 %v2252_v55 }
 0x37f   :  { %1698 = vmatprep.subr.bf16.mxu0 %v2257_v56 }
 0x382   :  { %1699 = vmatpush1.bf16.msra.mxu0 %v2255_v57 }
 0x383   :  { %1700 = vmatprep.subr.bf16.mxu0 %v2260_v58 }
 0x386   :  { %1701 = vmatpush1.bf16.msra.mxu0 %v2258_v59 }
 0x387   :  { %1702 = vmatprep.subr.bf16.mxu0 %v2263_v60 }
 0x38a   :  { %1703 = vmatpush1.bf16.msra.mxu0 %v2261_v61 }
 0x38b   :  { %1704 = vmatprep.subr.bf16.mxu0 %v2266_v62 }
 0x38e   :  { %1705 = vmatpush1.bf16.msra.mxu0 %v2264_v63 }
 0x38f   :  { %1706 = vmatprep.subr.bf16.mxu0 %v2269_v0 }
 0x392   :  { %1707 = vmatpush1.bf16.msra.mxu0 %v2267_v1 }
 0x393   :  { %1708 = vmatprep.subr.bf16.mxu0 %v2272_v2 }
 0x396   :  { %1709 = vmatpush1.bf16.msra.mxu0 %v2270_v3 }
 0x397   :  { %1710 = vmatprep.subr.bf16.mxu0 %v2275_v4 }
 0x39a   :  { %1711 = vmatpush1.bf16.msra.mxu0 %v2273_v5 }
 0x39b   :  { %1712 = vmatprep.subr.bf16.mxu0 %v2278_v6 }
 0x39e   :  { %1713 = vmatpush1.bf16.msra.mxu0 %v2276_v7 }
 0x39f   :  { %1714 = vmatprep.subr.bf16.mxu0 %v2281_v8 }
 0x3a2   :  { %1715 = vmatpush1.bf16.msra.mxu0 %v2279_v9 }
 0x3a3   :  { %1716 = vmatprep.subr.bf16.mxu0 %v2284_v10 }
 0x3a6   :  { %1717 = vmatpush1.bf16.msra.mxu0 %v2282_v11 }
 0x3a7   :  { %1718 = vmatprep.subr.bf16.mxu0 %v2287_v13 }
 0x3aa   :  { %1719 = vmatpush1.bf16.msra.mxu0 %v2285_v14 }
 0x3ab   :  { %1720 = vmatprep.subr.bf16.mxu0 %v2290_v16 }
 0x3ae   :  { %1721 = vmatpush1.bf16.msra.mxu0 %v2288_v17 }
 0x3b1   :  { %1723 = vmatmul.mubr.bf16.vlgmr.msra.gmra.mrb[8].mxu0 %v1252_v19 }
 0x484   :  { %v1724_v21 = vpop.f32.mrb[8].mxu0 }
 0x485   :  { %v1998_v22 = vadd.f32 %v1724_v21, %v1322_v52  ;;  %v1726_v23 = vpop.f32.mrb[9].mxu0 }
 0x486   :  { %v1999_v24 = vadd.f32 %v1726_v23, %v1326_v20  ;;  %v1728_v25 = vpop.f32.mrb[10].mxu0 }
 0x487   :  { %v1729_v26 = vpop.f32.mrb[11].mxu0 }
 0x488   :  { %v1953_v27 = vpack.c.bf16 %v1999_v24, %v1998_v22 }
 0x48a   :  { %1739 = vst [vmem:[#allocation11] sm:$0xff] %v1953_v27 }
 0x48b   :  { %2412 = shalt.err (!%p2409_p2)
}
 0x48c   :  { %s2413_s26 = scalar_lea.hbm %s2634_s9, 128 }
 0x48d   :  { %p2414_p3 = scmp.ne.s32.totalorder %s2634_s9, %s2413_s26  ;;  %p2417_p4 = scmp.lt.u32.totalorder %s2413_s26, %s2634_s9 }
 0x48f   :  { %p2419_p5 = pnand %p2417_p4, %p2414_p3 }
 0x491   :  { %2422 = shalt.err (!%p2419_p5)
}
 0x492   :  { %1749 = dma.vmem_to_hbm [thread:$0]  %s1747_s13, 128, %s2634_s9, [#allocation4]  }
 0x493   :  { %2429 = dma.done.wait [#allocation4], 128  }
 0x494   :  { %2430 = vsyncadd [#allocation4], 4294967168 }
 0x495   :  { %1753 = vsyncpa [#allocation3], 1 }
 0x496   :  { %1754 = vsyncpa [#allocation6], 1 }
 0x497   :  { %1755 = vsyncpa [#allocation9], 1 }
 0x498   :  { %1756 = vsyncpa [#allocation4], 1 }

</bundles_post_ra>
